<compile_context>
chip_gen: v5e
topology: v5e:2x2
jax: 0.10.0
libtpu: 0.0.40
codegen_flags: <defaults>
</compile_context>

<pallas_src>
import jax
import jax.numpy as jnp
from jax.experimental import pallas as pl
from jax.experimental.pallas import tpu as pltpu

INPUT_DIM = 7        # Conv1d in_channels
D_MODEL = 128        # Conv1d out_channels (lane-aligned)
KERNEL_SIZE = 3      # Conv1d kernel_size, padding = kernel_size // 2


def _round_up(a, m):
    return ((a + m - 1) // m) * m


def _pick_bb(B, S, max_bb=8, target_rows=2048):
    """Batch elements per grid step: bb | B, bb*S near target, >=2 grid steps."""
    bb = max(1, min(max_bb, B, max(1, target_rows // max(S, 1))))
    while B % bb:
        bb -= 1
    if bb == B and B > 1:          # keep >= 2 grid steps (v7x has 2 TensorCores)
        bb = max(1, B // 2)
        while B % bb:
            bb -= 1
    return bb


def conv_embed_kernel(x_ref, w_ref, o_ref):
    # x_ref: (bb, S + 2*pad, Cp)   padded input window (bias "ones" channel folded in)
    # w_ref: (K, Cp, D)            grid-invariant taps (bias folded into center tap)
    # o_ref: (bb, S, D)
    bb, S, _ = o_ref.shape
    K = w_ref.shape[0]
    w = w_ref[...]                                  # (K, Cp, D), VMEM resident
    for b in range(bb):                             # bb <= 8, unrolled
        xb = x_ref[b]                               # (S + 2*pad, Cp)
        acc = jnp.dot(xb[0:S, :], w[0], preferred_element_type=jnp.float32)
        for k in range(1, K):
            acc = acc + jnp.dot(xb[k:k + S, :], w[k],
                                preferred_element_type=jnp.float32)
        o_ref[b] = acc.astype(o_ref.dtype)


@jax.jit
def custom_embedding(x, conv_w, conv_b):
    """x: (B, S, C) f32; conv_w: (D, C, K); conv_b: (D,)  ->  (B, S, D) f32."""
    B, S, C = x.shape
    D, _, K = conv_w.shape
    pad = K // 2

    # Channel-pad to a sublane-friendly width; reserve one extra channel that is
    # constant 1.0 so the bias rides inside the matmul.
    Cp = _round_up(C + 1, 8)
    pieces = [x, jnp.ones((B, S, 1), x.dtype)]
    if Cp - C - 1 > 0:
        pieces.append(jnp.zeros((B, S, Cp - C - 1), x.dtype))
    x_aug = jnp.concatenate(pieces, axis=-1)                    # (B, S, Cp)
    xp = jnp.pad(x_aug, ((0, 0), (pad, pad), (0, 0)))           # (B, S+2*pad, Cp)

    # Weight taps: w[k, c, o] = conv_w[o, c, k]  (cross-correlation, like PyTorch).
    # Bias lives in the center tap's "ones" channel row (always a valid position).
    w = jnp.transpose(conv_w, (2, 1, 0)).astype(jnp.float32)    # (K, C, D)
    w = jnp.pad(w, ((0, 0), (0, Cp - C), (0, 0)))               # (K, Cp, D)
    w = w.at[K // 2, C, :].set(conv_b.astype(jnp.float32))

    bb = _pick_bb(B, S)
    Sp2 = S + 2 * pad

    cost = pl.CostEstimate(
        flops=2 * B * S * K * Cp * D,
        transcendentals=0,
        bytes_accessed=(B * Sp2 * Cp + K * Cp * D + B * S * D) * 4,
    )

    out = pl.pallas_call(
        conv_embed_kernel,
        out_shape=jax.ShapeDtypeStruct((B, S, D), jnp.float32),
        grid=(B // bb,),
        in_specs=[
            pl.BlockSpec((bb, Sp2, Cp), lambda i: (i, 0, 0)),
            pl.BlockSpec((K, Cp, D), lambda i: (0, 0, 0)),      # grid-invariant
        ],
        out_specs=pl.BlockSpec((bb, S, D), lambda i: (i, 0, 0)),
        compiler_params=pltpu.CompilerParams(
            dimension_semantics=("parallel",)),
        cost_estimate=cost,
    )(xp, w)

    return out


if __name__ == "__main__":
    key = jax.random.PRNGKey(0)
    kx, kw, kb = jax.random.split(key, 3)

    B, S = 2, 16
    x = jax.random.normal(kx, (B, S, INPUT_DIM), jnp.float32)
    conv_w = jax.random.normal(
        kw, (D_MODEL, INPUT_DIM, KERNEL_SIZE), jnp.float32) * 0.05
    conv_b = jax.random.normal(kb, (D_MODEL,), jnp.float32) * 0.05

    out = custom_embedding(x, conv_w, conv_b)
    out = jax.block_until_ready(out)
    assert out.shape == (B, S, D_MODEL), out.shape
    assert bool(jnp.all(jnp.isfinite(out)))

    # Independent reference: same "same"-padded cross-correlation via lax.conv
    # (JAX convs are cross-correlations, matching PyTorch Conv1d semantics).
    ref = jax.lax.conv_general_dilated(
        x, jnp.transpose(conv_w, (2, 1, 0)),
        window_strides=(1,),
        padding=((KERNEL_SIZE // 2, KERNEL_SIZE // 2),),
        dimension_numbers=("NWC", "WIO", "NWC")) + conv_b
    assert bool(jnp.allclose(out, ref, atol=1e-4, rtol=1e-4)), float(
        jnp.max(jnp.abs(out - ref)))

    print("KERNEL_OK")
</pallas_src>

<mosaic_0001>
module attributes {stable_mosaic.version = 11 : i64} {
  func.func @conv_embed_kernel(%arg0: i32, %arg1: memref<1x18x8xf32, #tpu.memory_space<vmem>>, %arg2: memref<3x8x128xf32, #tpu.memory_space<vmem>>, %arg3: memref<1x16x128xf32, #tpu.memory_space<vmem>>) attributes {dimension_semantics = [#tpu.dimension_semantics<parallel>], iteration_bounds = array<i64: 2>, scalar_prefetch = 0 : i64, scratch_operands = 0 : i64, tpu.core_type = #tpu.core_type<tc>, window_params = [{transform_indices = @transform_0, window_bounds = array<i64: 1, 18, 8>}, {pipeline_mode = #tpu.pipeline_mode<synchronous>, transform_indices = @transform_1, window_bounds = array<i64: 3, 8, 128>}, {transform_indices = @transform_2, window_bounds = array<i64: 1, 16, 128>}]} {
    %c0 = arith.constant 0 : index
    %c0_0 = arith.constant 0 : index
    %c0_1 = arith.constant 0 : index
    %0 = vector.load %arg2[%c0, %c0_0, %c0_1] : memref<3x8x128xf32, #tpu.memory_space<vmem>>, vector<3x8x128xf32>
    %c0_2 = arith.constant 0 : index
    %c0_3 = arith.constant 0 : index
    %c0_4 = arith.constant 0 : index
    %1 = vector.load %arg1[%c0_2, %c0_3, %c0_4] : memref<1x18x8xf32, #tpu.memory_space<vmem>>, vector<1x18x8xf32>
    %2 = vector.shape_cast %1 : vector<1x18x8xf32> to vector<18x8xf32>
    %3 = vector.extract_strided_slice %2 {offsets = [0, 0], sizes = [16, 8], strides = [1, 1]} : vector<18x8xf32> to vector<16x8xf32>
    %4 = vector.extract_strided_slice %0 {offsets = [0, 0, 0], sizes = [1, 8, 128], strides = [1, 1, 1]} : vector<3x8x128xf32> to vector<1x8x128xf32>
    %5 = vector.shape_cast %4 : vector<1x8x128xf32> to vector<8x128xf32>
    %cst = arith.constant dense<0.000000e+00> : vector<16x128xf32>
    %6 = tpu.matmul %3, %5, %cst {dimension_numbers = #tpu.dot_dimension_numbers<[1], [0], [0], [1], [0, 0, 1, 1], [], []>} : vector<16x8xf32>, vector<8x128xf32>, vector<16x128xf32> -> vector<16x128xf32>
    %7 = vector.extract_strided_slice %2 {offsets = [1, 0], sizes = [16, 8], strides = [1, 1]} : vector<18x8xf32> to vector<16x8xf32>
    %8 = vector.extract_strided_slice %0 {offsets = [1, 0, 0], sizes = [1, 8, 128], strides = [1, 1, 1]} : vector<3x8x128xf32> to vector<1x8x128xf32>
    %9 = vector.shape_cast %8 : vector<1x8x128xf32> to vector<8x128xf32>
    %cst_5 = arith.constant dense<0.000000e+00> : vector<16x128xf32>
    %10 = tpu.matmul %7, %9, %cst_5 {dimension_numbers = #tpu.dot_dimension_numbers<[1], [0], [0], [1], [0, 0, 1, 1], [], []>} : vector<16x8xf32>, vector<8x128xf32>, vector<16x128xf32> -> vector<16x128xf32>
    %11 = arith.addf %6, %10 : vector<16x128xf32>
    %12 = vector.extract_strided_slice %2 {offsets = [2, 0], sizes = [16, 8], strides = [1, 1]} : vector<18x8xf32> to vector<16x8xf32>
    %13 = vector.extract_strided_slice %0 {offsets = [2, 0, 0], sizes = [1, 8, 128], strides = [1, 1, 1]} : vector<3x8x128xf32> to vector<1x8x128xf32>
    %14 = vector.shape_cast %13 : vector<1x8x128xf32> to vector<8x128xf32>
    %cst_6 = arith.constant dense<0.000000e+00> : vector<16x128xf32>
    %15 = tpu.matmul %12, %14, %cst_6 {dimension_numbers = #tpu.dot_dimension_numbers<[1], [0], [0], [1], [0, 0, 1, 1], [], []>} : vector<16x8xf32>, vector<8x128xf32>, vector<16x128xf32> -> vector<16x128xf32>
    %16 = arith.addf %11, %15 : vector<16x128xf32>
    %c0_7 = arith.constant 0 : index
    %c0_8 = arith.constant 0 : index
    %c0_9 = arith.constant 0 : index
    %17 = vector.load %arg3[%c0_7, %c0_8, %c0_9] : memref<1x16x128xf32, #tpu.memory_space<vmem>>, vector<1x16x128xf32>
    %18 = vector.shape_cast %17 : vector<1x16x128xf32> to vector<16x128xf32>
    %19 = vector.shape_cast %16 : vector<16x128xf32> to vector<1x16x128xf32>
    tpu.vector_store %arg3[%c0_7, %c0_8, %c0_9], %19 {strides = array<i32>} : memref<1x16x128xf32, #tpu.memory_space<vmem>>, vector<1x16x128xf32>,
    return
  }
  func.func @transform_0(%arg0: i32) -> (i32, i32, i32) {
    %c0_i32 = arith.constant 0 : i32
    %c0_i32_0 = arith.constant 0 : i32
    %c0_i32_1 = arith.constant 0 : i32
    return %arg0, %c0_i32, %c0_i32_0 : i32, i32, i32
  }
  func.func @transform_1(%arg0: i32) -> (i32, i32, i32) {
    %c0_i32 = arith.constant 0 : i32
    %c0_i32_0 = arith.constant 0 : i32
    %c0_i32_1 = arith.constant 0 : i32
    %c0_i32_2 = arith.constant 0 : i32
    return %c0_i32, %c0_i32_0, %c0_i32_1 : i32, i32, i32
  }
  func.func @transform_2(%arg0: i32) -> (i32, i32, i32) {
    %c0_i32 = arith.constant 0 : i32
    %c0_i32_0 = arith.constant 0 : i32
    %c0_i32_1 = arith.constant 0 : i32
    return %arg0, %c0_i32, %c0_i32_0 : i32, i32, i32
  }
}

</mosaic_0001>

<bundles_post_ra>
// kernel: custom_embedding.1
= control target key start
LH: loop header
LB: loop body
LE: loop exit
PB: predicated region body
PF: predicated region fallthrough
CT: control target
= control target key end

     0   :  { %7 = vsyncpa [#allocation3], 0  ;;  %s571_s0 = inlined_call_operand.vmem [shape: f32[2,18,8], index: 0, kind: input, shape index: {}]   ;;  %s572_s1 = inlined_call_operand.vmem [shape: f32[3,8,128], index: 1, kind: input, shape index: {}]   ;;  %s573_s2 = inlined_call_operand.hbm [shape: f32[2,16,128], index: 2, kind: output, shape index: {}]  }
   0x1   :  { %9 = vsyncpa [#allocation3 + $0x1], 0  ;;  %s469_s9 = smov 0   ;;  %s471_s10 = smov 0  }
   0x2   :  { %s473_s11 = smov 0   ;;  %s475_s12 = smov 0  }
   0x3 LB: > { %s490_s13 = sadd.s32 4294967295, %s450_s12   ;;  %s327_s14 = sadd.s32 4294967294, %s450_s12   ;;  %s450_s12 = sphi %s475_s12, %s579_s12   ;;  %s446_s11 = sphi %s473_s11, %s578_s11   ;;  %s442_s10 = sphi %s471_s10, %s577_s10   ;;  %s438_s9 = sphi %s469_s9, %s576_s9  }
   0x4   : > { %s494_s15 = sadd.s32 1, %s450_s12   ;;  %s69_s16 = sadd.s32 1, %s446_s11 }
   0x5   : > { %s66_s17 = ssub.s32 %s450_s12, %s494_s15  ;;  %p79_p0 = scmp.ne.s32.totalorder %s446_s11, %s442_s10 }
   0x6   : > { %p67_p1 = scmp.eq.s32.totalorder %s66_s17, 0  ;;  %p80_p2 = scmp.eq.s32.totalorder %s490_s13, 1 }
   0x7   : > { %p85_p3 = scmp.ne.s32.totalorder %s442_s10, %s438_s9  ;;  %p86_p4 = scmp.eq.s32.totalorder %s327_s14, 1 }
   0x8   : > { %s505_s18 = scalar_select %p67_p1, %s446_s11, %s69_s16  }
   0x9   : > { %p507_p5 = por %p80_p2, %p79_p0  ;;  %p511_p6 = por %p86_p4, %p85_p3 }
   0xa   : > { %p330_p7 = scmp.ge.s32.totalorder %s450_s12, 1  ;;  %p115_p8 = scmp.lt.s32.totalorder %s450_s12, 3 }
   0xc   : > { %p116_p9 = pnand %p330_p7, %p115_p8 }
   0xd   : > { %p137_p10 = scmp.lt.s32.totalorder (!%p116_p9), %s490_s13, 1  ;;  %s134_s4 = sand.u32 (!%p116_p9), 1, %s442_s10  }
   0xe   : > { %119 = sbr.rel (%p116_p9) target bundleno = 174 (0xae), region = 28  ;;  %s331_s5 = sshll.u32 (!%p116_p9), %s134_s4, 4 }
   0xf   : > { %s344_s6 = sshll.u32 (!%p116_p9), %s490_s13, 4  ;;  %s136_s16 = scalar_lea.vmem (!%p116_p9), [#allocation2], %s331_s5 }
  0x10   : > { %s261_s14 = scalar_lea.hbm (!%p116_p9), %s573_s2, %s344_s6  ;;  %s262_s17 = sshll.u32 (!%p116_p9), %s136_s16, 4  ;;  %s263_s17 = int_to_ptr.vmem [resolvable:$true] %s262_s17 }
  0x11   : > { %s264_s21 = sshll.u32 (!%p116_p9), %s261_s14, 4  ;;  %s408_s26 = scalar_lea.hbm (!%p116_p9), %s573_s2, 32  ;;  %s265_s21 = int_to_ptr.hbm [resolvable:$true] %s264_s21 }
  0x12   : > { %s402_s22 = sshra.s32 (!%p116_p9), %s265_s21, 4  ;;  %s403_s22 = int_to_ptr.hbm [resolvable:$true] %s402_s22 }
  0x13   : > { %v144_v0 = vld [vmem:[%s572_s1 + $0x10] sm:$0xff]  ;;  %v143_v1 = vld [vmem:[%s572_s1 + $0x8] sm:$0xff]  ;;  %v142_v2 = vld [vmem:[%s572_s1] sm:$0xff]  ;;  %s138_s27 = scalar_select %p137_p10, %s490_s13, 1  ;;  %vm157_vm0 = vcmask 64512   ;;  %vm212_vm1 = vcmask 1045504  }
  0x14   : > { %237 = vmatpush.msra.mxu2 %v144_v0  ;;  %177 = vmatpush.msra.mxu0 %v143_v1  ;;  %vm151_vm2 = vcmask 1046528   ;;  %s250_s13 = scalar_lea.sflag [#allocation3], %s134_s4  ;;  %s404_s23 = scalar_lea.hbm %s403_s22, 16 }
  0x15   : > { %204 = vmatpush.msra.mxu1 %v142_v2  ;;  %345 = vmatpush.msra.mxu3 %v143_v1  ;;  %s346_s28 = smul.u32 24, %s138_s27  ;;  %p405_p11 = scmp.ne.s32.totalorder %s403_s22, %s404_s23 }
  0x16   : > { %p409_p0 = scmp.lt.s32.totalorder %s403_s22, %s573_s2  ;;  %p410_p1 = scmp.lt.s32.totalorder %s408_s26, %s404_s23 }
  0x17   : > { %s141_s3 = scalar_lea.vmem %s571_s0, %s346_s28  ;;  %p406_p12 = pnand %p405_p11, %p507_p5 }
  0x18   : > { %v145_v3 = vld [vmem:[%s141_s3] sm:$0xff]  ;;  %v146_v4 = vld [vmem:[%s141_s3 + $0x8] sm:$0xff]  ;;  %v147_v5 = vld [vmem:[%s141_s3 + $0x10] sm:$0x3]  ;;  %p411_p2 = por %p410_p1, %p409_p0 }
  0x19   : > { %v213_v6 = vrot.slane %v145_v3, 2  ;;  %v214_v7 = vrot.slane %v146_v4, 2  ;;  %v152_v8 = vrot.slane %v145_v3, 1  ;;  %v153_v9 = vrot.slane %v146_v4, 1  ;;  %335 = vmatmul.msk.f32.vlgmr.msra.gmra.mxu1 %vm157_vm0, %v145_v3  ;;  %p407_p13 = pneg %p406_p12 }
  0x1a   : > { %v155_v10 = vrot.slane %v147_v5, 1  ;;  %v216_v14 = vrot.slane %v147_v5, 2 }
  0x1b   : > { %v215_v11 = vsel %vm212_vm1, %v213_v6, %v214_v7  ;;  %v154_v12 = vsel %vm151_vm2, %v152_v8, %v153_v9  ;;  %p412_p3 = pnand %p411_p2, %p407_p13 }
  0x1c   : > { %337 = vmatmul.msk.f32.vlgmr.msra.gmra.mxu2 %vm157_vm0, %v215_v11  ;;  %333 = vmatmul.msk.f32.vlgmr.msra.gmra.mxu0 %vm157_vm0, %v154_v12  ;;  %v156_v13 = vsel %vm151_vm2, %v153_v9, %v155_v10  ;;  %v217_v15 = vsel %vm212_vm1, %v214_v7, %v216_v14 }
  0x1d   : > { %334 = vmatmul.msk.f32.vlgmr.msra.gmra.mxu3 %vm157_vm0, %v156_v13 }
  0x21   : > { %336 = vmatmul.msk.f32.gmra.mxu1 %vm157_vm0, %v146_v4 }
  0x24   : > { %338 = vmatmul.msk.f32.gmra.mxu2 %vm157_vm0, %v217_v15 }
  0x96   : > { %v206_v16 = vpop.f32.mrf.mxu1 }
  0x99   : > { %v179_v17 = vpop.f32.mrf.mxu0 }
  0x9a   : > { %v207_v18 = vadd.f32 %v206_v16, %v179_v17 }
  0x9e   : > { %v209_v22 = vpop.f32.mrf.mxu1 }
  0x9f   : > { %v239_v19 = vpop.f32.mrf.mxu2 }
  0xa0   : > { %v245_v20 = vadd.f32 %v239_v19, %v207_v18  ;;  %v182_v21 = vpop.f32.mrf.mxu3 }
  0xa1   : > { %v210_v23 = vadd.f32 %v209_v22, %v182_v21 }
  0xa2   : > { %247 = vst [vmem:[%s136_s16] sm:$0xff] %v245_v20 }
  0xa7   : > { %v242_v24 = vpop.f32.mrf.mxu2 }
  0xa8   : > { %v246_v25 = vadd.f32 %v242_v24, %v210_v23 }
  0xaa   : > { %248 = vst [vmem:[%s136_s16 + $0x8] sm:$0xff] %v246_v25 }
  0xab   : > { %415 = shalt.err (!%p412_p3)
}
  0xac   : > { %s452_s29 = smov 128   ;;  %s453_s30 = smov 8  }
  0xad   : > { %347 = dma.vmem_to_hbm [thread:$0]  (%p507_p5), %s263_s17, 256, %s265_s21, %s250_s13, %s452_s29, %s452_s29, %s453_s30  }
  0xae PF: > { %p353_p4 = scmp.ge.s32.totalorder %s450_s12, 2  ;;  %s279_s3 = sand.u32 1, %s438_s9  }
  0xaf   : > { %s280_s4 = scalar_lea.sflag [#allocation3], %s279_s3 }
  0xb0   : > { %p350_p7 = pnand %p353_p4, %p511_p6 }
  0xb2   : > { %p351_p8 = pneg %p350_p7 }
  0xb4   : > { %433 = dma.done.wait (%p351_p8), %s280_s4, 256  }
  0xb5   : > { %435 = vsyncadd (%p351_p8), %s280_s4, 4294967040  ;;  %p12_p9 = scmp.ge.s32.totalorder %s494_s15, 4   ;;  %s576_s9 = smov %s442_s10 }
  0xb6   : > { %s577_s10 = smov %s446_s11  ;;  %s578_s11 = smov %s505_s18 }
  0xb7   : > { %s579_s12 = smov %s494_s15  ;;  %14 = sbr.rel (!%p12_p9) target bundleno = 3 (0x3), region = 63 }
  0xbc   :  { %286 = vsyncpa [#allocation3], 1 }
  0xbd   :  { %288 = vsyncpa [#allocation3 + $0x1], 1 }

</bundles_post_ra>
